<compile_context>
chip_gen: v5e
topology: v5e:2x2
jax: 0.10.0
libtpu: 0.0.40
codegen_flags: <defaults>
</compile_context>

<pallas_src>
import functools

import jax
import jax.numpy as jnp
import numpy as np
from jax import lax
from jax.experimental import pallas as pl
from jax.experimental.pallas import tpu as pltpu


def _round_up(n: int, m: int) -> int:
    return ((n + m - 1) // m) * m


# ---------------------------------------------------------------------------
# Deterministic parameter initialization (mirrors WeightsInitializer + spectral
# radius rescaling from ReservoirLayer.__init_reservoir).  This is parameter
# setup, not the forward pass, so it is done host-side in numpy.
# ---------------------------------------------------------------------------
def _init_weights(rng: np.random.RandomState, shape, ratio=1.0, sparsity=0.0):
    w = (rng.rand(*shape) * 2.0 - 1.0) * ratio
    w[rng.rand(*shape) < sparsity] = 0.0
    return w.astype(np.float32)


def make_reservoir_params(in_size, hyperparams, seed=0):
    rng = np.random.RandomState(seed)
    R = hyperparams["reservoir_size"]
    w_in = _init_weights(
        rng, (in_size, R),
        ratio=hyperparams["input_ratio"], sparsity=hyperparams["input_sparsity"])
    w_hh = _init_weights(
        rng, (R, R), ratio=1.0, sparsity=hyperparams["reservoir_sparsity"])
    # TODO(synk): eigvals-based spectral-radius rescaling has no Pallas
    # equivalent; done host-side in numpy (matches torch.linalg.eigvals use).
    max_eig = np.abs(np.linalg.eigvals(w_hh.astype(np.float64))).max()
    w_hh = (w_hh * (hyperparams["spectral_radius"] / max_eig)).astype(np.float32)
    bias = _init_weights(
        rng, (1, R),
        ratio=hyperparams["input_ratio"], sparsity=hyperparams["input_sparsity"])
    return jnp.asarray(w_in), jnp.asarray(w_hh), jnp.asarray(bias)


# ---------------------------------------------------------------------------
# Kernel 1: hoisted input projection  u = x @ W_in + bias  for ALL timesteps,
# tiled over rows so it scales to long sequences without exceeding VMEM.
# ---------------------------------------------------------------------------
def _input_proj_kernel(x_ref, w_in_ref, bias_ref, u_ref):
    u_ref[...] = (
        jnp.dot(x_ref[...], w_in_ref[...], preferred_element_type=jnp.float32)
        + bias_ref[...]
    ).astype(u_ref.dtype)


def _input_projection(x2d, w_in, bias, tm=512):
    """x2d: (rows, in_size) with rows % 8 == 0 -> (rows, R) f32."""
    rows, in_size = x2d.shape
    R = w_in.shape[1]
    tm = int(min(tm, rows))                 # rows is a multiple of 8 by construction
    rows_pad = _round_up(rows, tm)
    if rows_pad != rows:
        x2d = jnp.pad(x2d, ((0, rows_pad - rows), (0, 0)))

    u = pl.pallas_call(
        _input_proj_kernel,
        out_shape=jax.ShapeDtypeStruct((rows_pad, R), jnp.float32),
        grid_spec=pltpu.PrefetchScalarGridSpec(
            num_scalar_prefetch=0,
            grid=(rows_pad // tm,),
            in_specs=[
                pl.BlockSpec((tm, in_size), lambda i: (i, 0)),
                pl.BlockSpec((in_size, R), lambda i: (0, 0)),   # resident
                pl.BlockSpec((1, R), lambda i: (0, 0)),          # resident
            ],
            out_specs=pl.BlockSpec((tm, R), lambda i: (i, 0)),
        ),
        compiler_params=pltpu.CompilerParams(
            dimension_semantics=("parallel",)),                  # 2 TCs on v7x
    )(x2d, w_in, bias)
    return u[:rows]


# ---------------------------------------------------------------------------
# Kernel 2: leaky-integrated recurrence.  One grid step == T_CHUNK timesteps.
# Hidden state h lives in a VMEM scratch that persists across the sequential
# ("arbitrary") grid axis; W_hh stays VMEM-resident (constant index map,
# single-buffered).
# ---------------------------------------------------------------------------
def _reservoir_kernel(u_ref, w_hh_ref, states_ref, h_scratch, *, alpha, t_chunk):
    @pl.when(pl.program_id(0) == 0)
    def _():
        h_scratch[...] = jnp.zeros_like(h_scratch)

    w_hh = w_hh_ref[...]                       # (R, R) loaded once per chunk
    one_minus_alpha = jnp.float32(1.0 - alpha)
    alpha_f = jnp.float32(alpha)

    # TODO(synk): explicit MXU RHS-hold (pltpu.matmul_push_rhs / matmul_acc_lhs /
    # matmul_pop) would avoid re-feeding W_hh to the MXU every timestep on the
    # serial path; kept as jnp.dot here for portability / robustness.
    def body(t, h):
        pre = jnp.dot(h, w_hh, preferred_element_type=jnp.float32) + u_ref[t]
        h_new = one_minus_alpha * h + alpha_f * jnp.tanh(pre)
        states_ref[t] = h_new.astype(states_ref.dtype)
        return h_new

    h_final = lax.fori_loop(0, t_chunk, body, h_scratch[...], unroll=True)
    h_scratch[...] = h_final


def reservoir_forward(x, w_in, w_hh, bias, alpha, t_chunk=32):
    """x: (seq, batch, in_size) -> states: (seq, batch, reservoir_size)."""
    seq, batch, in_size = x.shape
    R = w_hh.shape[0]

    # Shape hygiene: pad batch to a multiple of 8 (f32 sublane), pad seq so
    # t_chunk divides it (no t_chunk=1 cliff for awkward sequence lengths).
    batch_pad = max(8, _round_up(batch, 8))
    t_chunk = int(min(t_chunk, seq))
    seq_pad = _round_up(seq, t_chunk)
    n_chunks = seq_pad // t_chunk

    x_p = x.astype(jnp.float32)
    if (seq_pad, batch_pad) != (seq, batch):
        x_p = jnp.pad(x_p, ((0, seq_pad - seq), (0, batch_pad - batch), (0, 0)))

    # --- (1) hoisted projection: one tiled matmul over all (seq_pad*batch_pad) rows.
    u2d = _input_projection(x_p.reshape(seq_pad * batch_pad, in_size), w_in, bias)
    u = u2d.reshape(seq_pad, batch_pad, R)

    # --- (2) serial recurrence, chunked over the time axis.
    kernel = functools.partial(
        _reservoir_kernel, alpha=float(alpha), t_chunk=int(t_chunk))

    # Explicit VMEM budget: u (double-buffered) + states (double-buffered)
    # + W_hh (single-buffered) + h scratch, with headroom.
    blk_bytes = t_chunk * batch_pad * R * 4
    needed = 2 * blk_bytes + 2 * blk_bytes + R * R * 4 + batch_pad * R * 4
    vmem_limit = max(32 * 1024 * 1024, int(1.5 * needed))

    # TODO(synk): on v7x a leading "parallel" batch-block grid axis (with a
    # per-block h scratch and the init guard keyed on the time axis) would use
    # the second TensorCore for large batches; omitted here for small batch.
    states = pl.pallas_call(
        kernel,
        out_shape=jax.ShapeDtypeStruct((seq_pad, batch_pad, R), jnp.float32),
        grid_spec=pltpu.PrefetchScalarGridSpec(
            num_scalar_prefetch=0,
            grid=(n_chunks,),
            in_specs=[
                # T_CHUNK timesteps of the precomputed projection per grid step
                pl.BlockSpec((t_chunk, batch_pad, R), lambda c: (c, 0, 0)),
                # recurrent weights resident across the whole sequence;
                # constant index map -> single buffer is enough.
                pl.BlockSpec((R, R), lambda c: (0, 0),
                             pipeline_mode=pl.Buffered(1)),
            ],
            out_specs=pl.BlockSpec((t_chunk, batch_pad, R), lambda c: (c, 0, 0)),
            scratch_shapes=[pltpu.VMEM((batch_pad, R), jnp.float32)],
        ),
        compiler_params=pltpu.CompilerParams(
            dimension_semantics=("arbitrary",),      # recurrence is sequential
            vmem_limit_bytes=vmem_limit),
    )(u, w_hh)

    return states[:seq, :batch, :].astype(x.dtype)


# ---------------------------------------------------------------------------
# Pure-JAX reference (mirrors the PyTorch loop) for a sanity check.
# ---------------------------------------------------------------------------
def reservoir_reference(x, w_in, w_hh, bias, alpha):
    def step(h, x_i):
        h_new = (1.0 - alpha) * h + alpha * jnp.tanh(x_i @ w_in + h @ w_hh + bias)
        return h_new, h_new
    h0 = jnp.zeros((x.shape[1], w_hh.shape[0]), dtype=x.dtype)
    _, states = jax.lax.scan(step, h0, x)
    return states


if __name__ == "__main__":
    hyperparams = {
        "reservoir_size": 128,
        "input_ratio": 1.0,
        "input_sparsity": 0.1,
        "reservoir_sparsity": 0.5,
        "spectral_radius": 0.9,
        "alpha": 0.5,
    }
    seq, batch, in_size = 8, 4, 16

    w_in, w_hh, bias = make_reservoir_params(in_size, hyperparams, seed=0)

    key = jax.random.PRNGKey(0)
    x = jax.random.normal(key, (seq, batch, in_size), dtype=jnp.float32)

    states = jax.block_until_ready(
        reservoir_forward(x, w_in, w_hh, bias, hyperparams["alpha"]))
    ref = jax.block_until_ready(
        reservoir_reference(x, w_in, w_hh, bias, hyperparams["alpha"]))

    assert states.shape == (seq, batch, hyperparams["reservoir_size"])
    np.testing.assert_allclose(np.asarray(states), np.asarray(ref),
                               rtol=1e-5, atol=1e-5)

    print("KERNEL_OK")
</pallas_src>

<mosaic_0001>
module attributes {stable_mosaic.version = 11 : i64} {
  func.func @_input_proj_kernel(%arg0: i32, %arg1: memref<64x16xf32, #tpu.memory_space<vmem>>, %arg2: memref<16x128xf32, #tpu.memory_space<vmem>>, %arg3: memref<1x128xf32, #tpu.memory_space<vmem>>, %arg4: memref<64x128xf32, #tpu.memory_space<vmem>>) attributes {dimension_semantics = [#tpu.dimension_semantics<parallel>], iteration_bounds = array<i64: 1>, scalar_prefetch = 0 : i64, scratch_operands = 0 : i64, tpu.core_type = #tpu.core_type<tc>, window_params = [{transform_indices = @transform_0, window_bounds = array<i64: 64, 16>}, {pipeline_mode = #tpu.pipeline_mode<synchronous>, transform_indices = @transform_1, window_bounds = array<i64: 16, 128>}, {pipeline_mode = #tpu.pipeline_mode<synchronous>, transform_indices = @transform_2, window_bounds = array<i64: 1, 128>}, {transform_indices = @transform_3, window_bounds = array<i64: 64, 128>}]} {
    %c0 = arith.constant 0 : index
    %c0_0 = arith.constant 0 : index
    %0 = vector.load %arg1[%c0, %c0_0] : memref<64x16xf32, #tpu.memory_space<vmem>>, vector<64x16xf32>
    %c0_1 = arith.constant 0 : index
    %c0_2 = arith.constant 0 : index
    %1 = vector.load %arg2[%c0_1, %c0_2] : memref<16x128xf32, #tpu.memory_space<vmem>>, vector<16x128xf32>
    %cst = arith.constant dense<0.000000e+00> : vector<64x128xf32>
    %2 = tpu.matmul %0, %1, %cst {dimension_numbers = #tpu.dot_dimension_numbers<[1], [0], [0], [1], [0, 0, 1, 1], [], []>} : vector<64x16xf32>, vector<16x128xf32>, vector<64x128xf32> -> vector<64x128xf32>
    %c0_3 = arith.constant 0 : index
    %c0_4 = arith.constant 0 : index
    %3 = vector.load %arg3[%c0_3, %c0_4] : memref<1x128xf32, #tpu.memory_space<vmem>>, vector<1x128xf32>
    %4 = vector.broadcast %3 : vector<1x128xf32> to vector<64x128xf32>
    %5 = arith.addf %2, %4 : vector<64x128xf32>
    %c0_5 = arith.constant 0 : index
    %c0_6 = arith.constant 0 : index
    %6 = vector.load %arg4[%c0_5, %c0_6] : memref<64x128xf32, #tpu.memory_space<vmem>>, vector<64x128xf32>
    tpu.vector_store %arg4[%c0_5, %c0_6], %5 {strides = array<i32>} : memref<64x128xf32, #tpu.memory_space<vmem>>, vector<64x128xf32>,
    return
  }
  func.func @transform_0(%arg0: i32) -> (i32, i32) {
    %c0_i32 = arith.constant 0 : i32
    %c0_i32_0 = arith.constant 0 : i32
    return %arg0, %c0_i32 : i32, i32
  }
  func.func @transform_1(%arg0: i32) -> (i32, i32) {
    %c0_i32 = arith.constant 0 : i32
    %c0_i32_0 = arith.constant 0 : i32
    %c0_i32_1 = arith.constant 0 : i32
    return %c0_i32, %c0_i32_0 : i32, i32
  }
  func.func @transform_2(%arg0: i32) -> (i32, i32) {
    %c0_i32 = arith.constant 0 : i32
    %c0_i32_0 = arith.constant 0 : i32
    %c0_i32_1 = arith.constant 0 : i32
    return %c0_i32, %c0_i32_0 : i32, i32
  }
  func.func @transform_3(%arg0: i32) -> (i32, i32) {
    %c0_i32 = arith.constant 0 : i32
    %c0_i32_0 = arith.constant 0 : i32
    return %arg0, %c0_i32 : i32, i32
  }
}

</mosaic_0001>

<bundles_post_ra>
// kernel: tpu_custom_call.1
= control target key start
LH: loop header
LB: loop body
LE: loop exit
PB: predicated region body
PF: predicated region fallthrough
CT: control target
= control target key end

     0   :  { %vm29_vm0 = vcmask 130048   ;;  %s232_s0 = inlined_call_operand.vmem [shape: f32[64,16], index: 0, kind: input, shape index: {}]   ;;  %s233_s1 = inlined_call_operand.vmem [shape: f32[16,128], index: 1, kind: input, shape index: {}]   ;;  %s234_s2 = inlined_call_operand.vmem [shape: f32[1,128], index: 2, kind: input, shape index: {}]   ;;  %s235_s3 = inlined_call_operand.hbm [shape: f32[64,128], index: 3, kind: output, shape index: {}]  }
   0x1   :  { %v24_v0 = vld [vmem:[%s233_s1 + $0x8] sm:$0xff]  ;;  %v23_v1 = vld [vmem:[%s233_s1] sm:$0xff]  ;;  %v21_v3 = vld [vmem:[%s232_s0 + $0x30] sm:$0xff] }
   0x2   :  { %130 = vmatpush.msra.mxu2 %v24_v0  ;;  %131 = vmatpush.msra.mxu3 %v24_v0  ;;  %v19_v2 = vld [vmem:[%s232_s0 + $0x20] sm:$0xff]  ;;  %v17_v5 = vld [vmem:[%s232_s0 + $0x10] sm:$0xff] }
   0x3   :  { %68 = vmatpush.msra.mxu0 %v24_v0  ;;  %129 = vmatpush.msra.mxu1 %v24_v0  ;;  %v15_v4 = vld [vmem:[%s232_s0] sm:$0xff] }
   0x4   :  { %133 = vmatpush.msra.mxu2 %v23_v1  ;;  %134 = vmatpush.msra.mxu3 %v23_v1 }
   0x5   :  { %125 = vmatmul.msk.f32.vlgmr.msra.gmra.mxu2 %vm29_vm0, %v19_v2  ;;  %127 = vmatmul.msk.f32.vlgmr.msra.gmra.mxu3 %vm29_vm0, %v21_v3 }
   0x6   :  { %8 = vsyncpa [#allocation3], 0  ;;  %69 = vmatpush.msra.mxu0 %v23_v1  ;;  %132 = vmatpush.msra.mxu1 %v23_v1  ;;  %v20_v6 = vld [vmem:[%s232_s0 + $0x28] sm:$0xff]  ;;  %v22_v7 = vld [vmem:[%s232_s0 + $0x38] sm:$0xff]  ;;  %s109_s8 = sshll.u32 %s235_s3, 4  ;;  %s166_s9 = smov 128   ;;  %s110_s8 = int_to_ptr.hbm [resolvable:$true] %s109_s8 }
   0x7   :  { %121 = vmatmul.msk.f32.vlgmr.msra.gmra.mxu0 %vm29_vm0, %v15_v4  ;;  %123 = vmatmul.msk.f32.vlgmr.msra.gmra.mxu1 %vm29_vm0, %v17_v5  ;;  %v16_v8 = vld [vmem:[%s232_s0 + $0x8] sm:$0xff]  ;;  %v18_v9 = vld [vmem:[%s232_s0 + $0x18] sm:$0xff]  ;;  %v138_v10 = vld [vmem:[%s234_s2] ss:$0 sm:$0xff]  ;;  %s165_s0 = smov [#allocation2]   ;;  %s167_s10 = smov 8  }
   0x8   :  { %s107_s6 = sshll.u32 %s165_s0, 4  ;;  %s108_s6 = int_to_ptr.vmem [resolvable:$true] %s107_s6 }
   0xd   :  { %126 = vmatmul.msk.f32.gmra.mxu2 %vm29_vm0, %v20_v6  ;;  %128 = vmatmul.msk.f32.gmra.mxu3 %vm29_vm0, %v22_v7 }
   0xf   :  { %122 = vmatmul.msk.f32.gmra.mxu0 %vm29_vm0, %v16_v8  ;;  %124 = vmatmul.msk.f32.gmra.mxu1 %vm29_vm0, %v18_v9 }
  0x84   :  { %v71_v11 = vpop.f32.mrf.mxu0  ;;  %v77_v12 = vpop.f32.mrf.mxu1 }
  0x85   :  { %v72_v13 = vadd.f32 %v138_v10, %v71_v11  ;;  %v78_v14 = vadd.f32 %v138_v10, %v77_v12 }
  0x87   :  { %95 = vst [vmem:[#allocation2] sm:$0xff] %v72_v13 }
  0x88   :  { %97 = vst [vmem:[#allocation2 + $0x10] sm:$0xff] %v78_v14  ;;  %v83_v15 = vpop.f32.mrf.mxu2  ;;  %v89_v16 = vpop.f32.mrf.mxu3 }
  0x89   :  { %v84_v17 = vadd.f32 %v138_v10, %v83_v15  ;;  %v90_v18 = vadd.f32 %v138_v10, %v89_v16 }
  0x8b   :  { %99 = vst [vmem:[#allocation2 + $0x20] sm:$0xff] %v84_v17 }
  0x8c   :  { %101 = vst [vmem:[#allocation2 + $0x30] sm:$0xff] %v90_v18  ;;  %v74_v19 = vpop.f32.mrf.mxu0  ;;  %v80_v20 = vpop.f32.mrf.mxu1 }
  0x8d   :  { %v75_v21 = vadd.f32 %v138_v10, %v74_v19  ;;  %v81_v22 = vadd.f32 %v138_v10, %v80_v20 }
  0x8f   :  { %96 = vst [vmem:[#allocation2 + $0x8] sm:$0xff] %v75_v21 }
  0x90   :  { %98 = vst [vmem:[#allocation2 + $0x18] sm:$0xff] %v81_v22  ;;  %v86_v23 = vpop.f32.mrf.mxu2  ;;  %v92_v24 = vpop.f32.mrf.mxu3 }
  0x91   :  { %v87_v25 = vadd.f32 %v138_v10, %v86_v23  ;;  %v93_v26 = vadd.f32 %v138_v10, %v92_v24 }
  0x93   :  { %100 = vst [vmem:[#allocation2 + $0x28] sm:$0xff] %v87_v25 }
  0x94   :  { %102 = vst [vmem:[#allocation2 + $0x38] sm:$0xff] %v93_v26 }
  0x95   :  { %115 = dma.vmem_to_hbm [thread:$0]  %s108_s6, 1024, %s110_s8, [#allocation3], %s166_s9, %s166_s9, %s167_s10  }
  0x96   :  { %163 = dma.done.wait [#allocation3], 1024  }
  0x97   :  { %164 = vsyncadd [#allocation3], 4294966272 }
  0x98   :  { %120 = vsyncpa [#allocation3], 1 }

</bundles_post_ra>
